<compile_context>
chip_gen: v7x
topology: tpu7x:2x2x1
jax: 0.10.0
libtpu: 0.0.40
codegen_flags: <defaults>
</compile_context>

<pallas_src>
import jax
import jax.numpy as jnp
from jax import lax
from jax.experimental import pallas as pl
from jax.experimental.pallas import tpu as pltpu

ACTION_DIM = 8
STATE_DIM = 34
HIDDEN_DIM = 256

STATE_PAD = 64              # fc1 contraction dim padded to a multiple of 8
HEAD_HALF = 64              # mean head lanes [0,64), std head lanes [64,128)
HEAD_SLAB = 2 * HEAD_HALF   # single lane-dense 128-wide fused-head output


def _round_up(n, m):
    return (n + m - 1) // m * m


def actor_kernel(x_ref, w1_ref, b1_ref, w2_ref, b2_ref, wh_ref, bh_ref, out_ref):
    # fc1 + relu (K already padded to 64; padded w1 rows are zero)
    h1 = jnp.dot(x_ref[...], w1_ref[...], preferred_element_type=jnp.float32) + b1_ref[...]
    h1 = jnp.maximum(h1, 0.0)

    # fc2 + relu
    h2 = jnp.dot(h1, w2_ref[...], preferred_element_type=jnp.float32) + b2_ref[...]
    h2 = jnp.maximum(h2, 0.0)

    # fused heads: one [256, 128] matmul, then per-lane select of tanh vs exp.
    z = jnp.dot(h2, wh_ref[...], preferred_element_type=jnp.float32) + bh_ref[...]
    lane = lax.broadcasted_iota(jnp.int32, z.shape, dimension=1)
    out_ref[...] = jnp.where(lane < HEAD_HALF, jnp.tanh(z), jnp.exp(z))


def pack_params(params):
    """Pad/fuse PyTorch-layout params into the kernel's layout (done once)."""
    w1, b1, w2, b2, w3, b3, wl, bl = params

    # fc1: zero-pad the contraction dim 34 -> 64.
    w1p = jnp.zeros((STATE_PAD, HIDDEN_DIM), jnp.float32).at[:STATE_DIM, :].set(w1)

    # Heads: fuse fc3 (mean) and log_std into one [256, 128] weight / [1, 128] bias.
    wh = jnp.zeros((HIDDEN_DIM, HEAD_SLAB), jnp.float32)
    wh = wh.at[:, :ACTION_DIM].set(w3)
    wh = wh.at[:, HEAD_HALF:HEAD_HALF + ACTION_DIM].set(wl)
    bh = jnp.zeros((1, HEAD_SLAB), jnp.float32)
    bh = bh.at[:, :ACTION_DIM].set(b3)
    bh = bh.at[:, HEAD_HALF:HEAD_HALF + ACTION_DIM].set(bl)

    return (w1p, b1, w2, b2, wh, bh)


def actor_forward(x, packed_params):
    """x: [B, STATE_DIM] float32. Returns (mean [B, ACTION_DIM], std [B, ACTION_DIM])."""
    w1p, b1, w2, b2, wh, bh = packed_params
    B = x.shape[0]

    # Batch tile: at least the 8-row sublane tile, capped at 256 rows so large
    # rollout batches stream through the grid while weights stay VMEM-resident.
    tb = min(256, _round_up(B, 8))
    b_pad = _round_up(B, tb)

    # Wrapper-side padding: batch -> multiple of tb, features 34 -> 64.
    xp = jnp.zeros((b_pad, STATE_PAD), jnp.float32).at[:B, :STATE_DIM].set(x)

    const = lambda i: (0, 0)   # weights/biases resident across all grid steps

    out = pl.pallas_call(
        actor_kernel,
        out_shape=jax.ShapeDtypeStruct((b_pad, HEAD_SLAB), jnp.float32),
        grid_spec=pltpu.PrefetchScalarGridSpec(
            num_scalar_prefetch=0,
            grid=(b_pad // tb,),
            in_specs=[
                pl.BlockSpec((tb, STATE_PAD), lambda i: (i, 0)),       # x tile
                pl.BlockSpec((STATE_PAD, HIDDEN_DIM), const),          # w1
                pl.BlockSpec((1, HIDDEN_DIM), const),                  # b1
                pl.BlockSpec((HIDDEN_DIM, HIDDEN_DIM), const),         # w2
                pl.BlockSpec((1, HIDDEN_DIM), const),                  # b2
                pl.BlockSpec((HIDDEN_DIM, HEAD_SLAB), const),          # fused head w
                pl.BlockSpec((1, HEAD_SLAB), const),                   # fused head b
            ],
            out_specs=pl.BlockSpec((tb, HEAD_SLAB), lambda i: (i, 0)),
        ),
        compiler_params=pltpu.CompilerParams(
            dimension_semantics=("parallel",),   # v7x: shard batch grid over 2 TCs
        ),
    )(xp, w1p, b1, w2, b2, wh, bh)

    mean = out[:B, :ACTION_DIM]
    std = out[:B, HEAD_HALF:HEAD_HALF + ACTION_DIM]
    return mean, std


def init_params(key):
    """Deterministic init mimicking PyTorch nn.Linear default (U[-1/sqrt(fan_in), +])."""
    def linear(k, fan_in, fan_out):
        kw, kb = jax.random.split(k)
        bound = 1.0 / jnp.sqrt(fan_in)
        w = jax.random.uniform(kw, (fan_in, fan_out), jnp.float32, -bound, bound)
        b = jax.random.uniform(kb, (1, fan_out), jnp.float32, -bound, bound)
        return w, b

    k1, k2, k3, k4 = jax.random.split(key, 4)
    w1, b1 = linear(k1, STATE_DIM, HIDDEN_DIM)
    w2, b2 = linear(k2, HIDDEN_DIM, HIDDEN_DIM)
    w3, b3 = linear(k3, HIDDEN_DIM, ACTION_DIM)
    wl, bl = linear(k4, HIDDEN_DIM, ACTION_DIM)
    return (w1, b1, w2, b2, w3, b3, wl, bl)


def reference_forward(x, params):
    w1, b1, w2, b2, w3, b3, wl, bl = params
    h1 = jnp.maximum(x @ w1 + b1, 0.0)
    h2 = jnp.maximum(h1 @ w2 + b2, 0.0)
    mean = jnp.tanh(h2 @ w3 + b3)
    std = jnp.exp(h2 @ wl + bl)      # NOTE: original module does not clamp log_std
    return mean, std


if __name__ == "__main__":
    key = jax.random.PRNGKey(0)
    kx, kx2, kp = jax.random.split(key, 3)

    params = init_params(kp)
    packed = pack_params(params)

    # Small batch (exercises the sublane-pad path: B=4 -> tile 8, grid (1,)).
    batch = 4
    x = jax.random.normal(kx, (batch, STATE_DIM), jnp.float32)
    mean, std = actor_forward(x, packed)
    jax.block_until_ready((mean, std))
    mean_ref, std_ref = reference_forward(x, params)
    assert mean.shape == (batch, ACTION_DIM) and std.shape == (batch, ACTION_DIM)
    assert jnp.allclose(mean, mean_ref, atol=1e-5, rtol=1e-5)
    assert jnp.allclose(std, std_ref, atol=1e-5, rtol=1e-5)

    # Ragged batch (exercises batch padding within one tile).
    batch2 = 20
    x2 = jax.random.normal(kx2, (batch2, STATE_DIM), jnp.float32)
    mean2, std2 = actor_forward(x2, packed)
    jax.block_until_ready((mean2, std2))
    mean2_ref, std2_ref = reference_forward(x2, params)
    assert jnp.allclose(mean2, mean2_ref, atol=1e-5, rtol=1e-5)
    assert jnp.allclose(std2, std2_ref, atol=1e-5, rtol=1e-5)

    print("KERNEL_OK")
</pallas_src>

<mosaic_0001>
module attributes {stable_mosaic.version = 11 : i64} {
  func.func @actor_kernel(%arg0: i32, %arg1: memref<8x64xf32, #tpu.memory_space<vmem>>, %arg2: memref<64x256xf32, #tpu.memory_space<vmem>>, %arg3: memref<1x256xf32, #tpu.memory_space<vmem>>, %arg4: memref<256x256xf32, #tpu.memory_space<vmem>>, %arg5: memref<1x256xf32, #tpu.memory_space<vmem>>, %arg6: memref<256x128xf32, #tpu.memory_space<vmem>>, %arg7: memref<1x128xf32, #tpu.memory_space<vmem>>, %arg8: memref<8x128xf32, #tpu.memory_space<vmem>>) attributes {dimension_semantics = [#tpu.dimension_semantics<parallel>], iteration_bounds = array<i64: 1>, scalar_prefetch = 0 : i64, scratch_operands = 0 : i64, tpu.core_type = #tpu.core_type<tc>, window_params = [{transform_indices = @transform_0, window_bounds = array<i64: 8, 64>}, {pipeline_mode = #tpu.pipeline_mode<synchronous>, transform_indices = @transform_1, window_bounds = array<i64: 64, 256>}, {pipeline_mode = #tpu.pipeline_mode<synchronous>, transform_indices = @transform_2, window_bounds = array<i64: 1, 256>}, {pipeline_mode = #tpu.pipeline_mode<synchronous>, transform_indices = @transform_3, window_bounds = array<i64: 256, 256>}, {pipeline_mode = #tpu.pipeline_mode<synchronous>, transform_indices = @transform_4, window_bounds = array<i64: 1, 256>}, {pipeline_mode = #tpu.pipeline_mode<synchronous>, transform_indices = @transform_5, window_bounds = array<i64: 256, 128>}, {pipeline_mode = #tpu.pipeline_mode<synchronous>, transform_indices = @transform_6, window_bounds = array<i64: 1, 128>}, {transform_indices = @transform_7, window_bounds = array<i64: 8, 128>}]} {
    %c0 = arith.constant 0 : index
    %c0_0 = arith.constant 0 : index
    %0 = vector.load %arg1[%c0, %c0_0] : memref<8x64xf32, #tpu.memory_space<vmem>>, vector<8x64xf32>
    %c0_1 = arith.constant 0 : index
    %c0_2 = arith.constant 0 : index
    %1 = vector.load %arg2[%c0_1, %c0_2] : memref<64x256xf32, #tpu.memory_space<vmem>>, vector<64x256xf32>
    %cst = arith.constant dense<0.000000e+00> : vector<8x256xf32>
    %2 = tpu.matmul %0, %1, %cst {dimension_numbers = #tpu.dot_dimension_numbers<[1], [0], [0], [1], [0, 0, 1, 1], [], []>} : vector<8x64xf32>, vector<64x256xf32>, vector<8x256xf32> -> vector<8x256xf32>
    %c0_3 = arith.constant 0 : index
    %c0_4 = arith.constant 0 : index
    %3 = vector.load %arg3[%c0_3, %c0_4] : memref<1x256xf32, #tpu.memory_space<vmem>>, vector<1x256xf32>
    %4 = vector.broadcast %3 : vector<1x256xf32> to vector<8x256xf32>
    %5 = arith.addf %2, %4 : vector<8x256xf32>
    %cst_5 = arith.constant 0.000000e+00 : f32
    %6 = vector.broadcast %cst_5 : f32 to vector<8x256xf32>
    %7 = arith.maximumf %5, %6 : vector<8x256xf32>
    %c0_6 = arith.constant 0 : index
    %c0_7 = arith.constant 0 : index
    %8 = vector.load %arg4[%c0_6, %c0_7] : memref<256x256xf32, #tpu.memory_space<vmem>>, vector<256x256xf32>
    %cst_8 = arith.constant dense<0.000000e+00> : vector<8x256xf32>
    %9 = tpu.matmul %7, %8, %cst_8 {dimension_numbers = #tpu.dot_dimension_numbers<[1], [0], [0], [1], [0, 0, 1, 1], [], []>} : vector<8x256xf32>, vector<256x256xf32>, vector<8x256xf32> -> vector<8x256xf32>
    %c0_9 = arith.constant 0 : index
    %c0_10 = arith.constant 0 : index
    %10 = vector.load %arg5[%c0_9, %c0_10] : memref<1x256xf32, #tpu.memory_space<vmem>>, vector<1x256xf32>
    %11 = vector.broadcast %10 : vector<1x256xf32> to vector<8x256xf32>
    %12 = arith.addf %9, %11 : vector<8x256xf32>
    %cst_11 = arith.constant 0.000000e+00 : f32
    %13 = vector.broadcast %cst_11 : f32 to vector<8x256xf32>
    %14 = arith.maximumf %12, %13 : vector<8x256xf32>
    %c0_12 = arith.constant 0 : index
    %c0_13 = arith.constant 0 : index
    %15 = vector.load %arg6[%c0_12, %c0_13] : memref<256x128xf32, #tpu.memory_space<vmem>>, vector<256x128xf32>
    %cst_14 = arith.constant dense<0.000000e+00> : vector<8x128xf32>
    %16 = tpu.matmul %14, %15, %cst_14 {dimension_numbers = #tpu.dot_dimension_numbers<[1], [0], [0], [1], [0, 0, 1, 1], [], []>} : vector<8x256xf32>, vector<256x128xf32>, vector<8x128xf32> -> vector<8x128xf32>
    %c0_15 = arith.constant 0 : index
    %c0_16 = arith.constant 0 : index
    %17 = vector.load %arg7[%c0_15, %c0_16] : memref<1x128xf32, #tpu.memory_space<vmem>>, vector<1x128xf32>
    %18 = vector.broadcast %17 : vector<1x128xf32> to vector<8x128xf32>
    %19 = arith.addf %16, %18 : vector<8x128xf32>
    %20 = tpu.iota {dimensions = array<i32: 1>} : vector<8x128xi32>
    %c64_i32 = arith.constant 64 : i32
    %21 = vector.broadcast %c64_i32 : i32 to vector<8x128xi32>
    %22 = arith.cmpi slt, %20, %21 : vector<8x128xi32>
    %23 = math.tanh %19 : vector<8x128xf32>
    %24 = math.exp %19 : vector<8x128xf32>
    %25 = arith.select %22, %23, %24 : vector<8x128xi1>, vector<8x128xf32>
    %c0_17 = arith.constant 0 : index
    %c0_18 = arith.constant 0 : index
    %26 = vector.load %arg8[%c0_17, %c0_18] : memref<8x128xf32, #tpu.memory_space<vmem>>, vector<8x128xf32>
    tpu.vector_store %arg8[%c0_17, %c0_18], %25 {strides = array<i32>} : memref<8x128xf32, #tpu.memory_space<vmem>>, vector<8x128xf32>,
    return
  }
  func.func @transform_0(%arg0: i32) -> (i32, i32) {
    %c0_i32 = arith.constant 0 : i32
    %c0_i32_0 = arith.constant 0 : i32
    return %arg0, %c0_i32 : i32, i32
  }
  func.func @transform_1(%arg0: i32) -> (i32, i32) {
    %c0_i32 = arith.constant 0 : i32
    %c0_i32_0 = arith.constant 0 : i32
    %c0_i32_1 = arith.constant 0 : i32
    return %c0_i32, %c0_i32_0 : i32, i32
  }
  func.func @transform_2(%arg0: i32) -> (i32, i32) {
    %c0_i32 = arith.constant 0 : i32
    %c0_i32_0 = arith.constant 0 : i32
    %c0_i32_1 = arith.constant 0 : i32
    return %c0_i32, %c0_i32_0 : i32, i32
  }
  func.func @transform_3(%arg0: i32) -> (i32, i32) {
    %c0_i32 = arith.constant 0 : i32
    %c0_i32_0 = arith.constant 0 : i32
    %c0_i32_1 = arith.constant 0 : i32
    return %c0_i32, %c0_i32_0 : i32, i32
  }
  func.func @transform_4(%arg0: i32) -> (i32, i32) {
    %c0_i32 = arith.constant 0 : i32
    %c0_i32_0 = arith.constant 0 : i32
    %c0_i32_1 = arith.constant 0 : i32
    return %c0_i32, %c0_i32_0 : i32, i32
  }
  func.func @transform_5(%arg0: i32) -> (i32, i32) {
    %c0_i32 = arith.constant 0 : i32
    %c0_i32_0 = arith.constant 0 : i32
    %c0_i32_1 = arith.constant 0 : i32
    return %c0_i32, %c0_i32_0 : i32, i32
  }
  func.func @transform_6(%arg0: i32) -> (i32, i32) {
    %c0_i32 = arith.constant 0 : i32
    %c0_i32_0 = arith.constant 0 : i32
    %c0_i32_1 = arith.constant 0 : i32
    return %c0_i32, %c0_i32_0 : i32, i32
  }
  func.func @transform_7(%arg0: i32) -> (i32, i32) {
    %c0_i32 = arith.constant 0 : i32
    %c0_i32_0 = arith.constant 0 : i32
    return %arg0, %c0_i32 : i32, i32
  }
}

</mosaic_0001>

<bundles_post_ra>
// kernel: tpu_custom_call.1
= control target key start
LH: loop header
LB: loop body
LE: loop exit
PB: predicated region body
PF: predicated region fallthrough
CT: control target
= control target key end

     0   :  { %12 = vsyncpa [#allocation3], 0  ;;  %s875_s0 = inlined_call_operand.hbm [shape: f32[8,64], index: 0, kind: input, shape index: {}]   ;;  %s876_s1 = inlined_call_operand.hbm [shape: f32[64,256], index: 1, kind: input, shape index: {}]   ;;  %s877_s2 = inlined_call_operand.vmem [shape: f32[1,256], index: 2, kind: input, shape index: {}]   ;;  %s878_s3 = inlined_call_operand.hbm [shape: f32[256,256], index: 3, kind: input, shape index: {}]   ;;  %s879_s4 = inlined_call_operand.vmem [shape: f32[1,256], index: 4, kind: input, shape index: {}]   ;;  %s880_s5 = inlined_call_operand.hbm [shape: f32[256,128], index: 5, kind: input, shape index: {}]   ;;  %s881_s6 = inlined_call_operand.vmem [shape: f32[1,128], index: 6, kind: input, shape index: {}]   ;;  %s882_s7 = inlined_call_operand.hbm [shape: f32[8,128], index: 7, kind: output, shape index: {}]  }
   0x1   :  { %13 = vsyncpa [#allocation6], 0 }
   0x2   :  { %14 = vsyncpa [#allocation9], 0 }
   0x3   :  { %15 = vsyncpa [#allocation4], 0  ;;  %s750_s24 = smov [#allocation5]   ;;  %s632_s28 = scalar_lea.hbm %s876_s1, 2048 }
   0x4   :  { %s31_s25 = sshll.u32 %s750_s24, 4  ;;  %p633_p0 = scmp.ne.s32.totalorder %s876_s1, %s632_s28  ;;  %s32_s25 = int_to_ptr.vmem [resolvable:$true] %s31_s25 }
   0x5   :  { %p636_p1 = scmp.lt.u32.totalorder %s632_s28, %s876_s1 }
   0x7   :  { %p638_p2 = pnand %p636_p1, %p633_p0 }
   0x9   :  { %641 = shalt.err (!%p638_p2)
}
   0xa   :  { %s642_s10 = scalar_lea.vmem %s32_s25, 2048  ;;  %p647_p4 = scmp.lt.s32.totalorder %s32_s25, %s32_s25 }
   0xb   :  { %p643_p3 = scmp.ne.s32.totalorder %s32_s25, %s642_s10  ;;  %p648_p5 = scmp.lt.s32.totalorder %s642_s10, %s642_s10 }
   0xd   :  { %p649_p6 = por %p648_p5, %p647_p4 }
   0xf   :  { %p650_p7 = pnand %p649_p6, %p643_p3 }
  0x11   :  { %653 = shalt.err (!%p650_p7)
}
  0x12   :  { %s751_s11 = smov 256   ;;  %s752_s12 = smov 16  }
  0x13   :  { %37 = dma.hbm_to_vmem [thread:$0]  %s876_s1, 2048, %s32_s25, [#allocation6], %s751_s11, %s751_s11, %s752_s12  }
  0x14   :  { %s753_s15 = smov [#allocation2]   ;;  %s754_s17 = smov [#allocation7]  }
  0x15   :  { %s22_s16 = sshll.u32 %s753_s15, 4  ;;  %s45_s18 = sshll.u32 %s754_s17, 4  ;;  %s23_s16 = int_to_ptr.vmem [resolvable:$true] %s22_s16  ;;  %s46_s18 = int_to_ptr.vmem [resolvable:$true] %s45_s18 }
  0x16   :  { %s654_s21 = scalar_lea.hbm %s875_s0, 128 }
  0x17   :  { %p655_p8 = scmp.ne.s32.totalorder %s875_s0, %s654_s21  ;;  %p658_p9 = scmp.lt.u32.totalorder %s654_s21, %s875_s0 }
  0x19   :  { %p660_p10 = pnand %p658_p9, %p655_p8 }
  0x1b   :  { %663 = shalt.err (!%p660_p10)
}
  0x1c   :  { %s664_s1 = scalar_lea.vmem %s23_s16, 128  ;;  %p669_p12 = scmp.lt.s32.totalorder %s23_s16, %s23_s16 }
  0x1d   :  { %p665_p11 = scmp.ne.s32.totalorder %s23_s16, %s664_s1  ;;  %p670_p13 = scmp.lt.s32.totalorder %s664_s1, %s664_s1 }
  0x1f   :  { %p671_p0 = por %p670_p13, %p669_p12 }
  0x21   :  { %p672_p1 = pnand %p671_p0, %p665_p11 }
  0x23   :  { %675 = shalt.err (!%p672_p1)
}
  0x24   :  { %25 = dma.hbm_to_vmem [thread:$0]  %s875_s0, 128, %s23_s16, [#allocation3]  }
  0x25   :  { %s676_s30 = scalar_lea.hbm %s878_s3, 8192 }
  0x26   :  { %p677_p2 = scmp.ne.s32.totalorder %s878_s3, %s676_s30  ;;  %p680_p3 = scmp.lt.u32.totalorder %s676_s30, %s878_s3 }
  0x28   :  { %p682_p4 = pnand %p680_p3, %p677_p2 }
  0x2a   :  { %685 = shalt.err (!%p682_p4)
}
  0x2b   :  { %s686_s14 = scalar_lea.vmem %s46_s18, 8192  ;;  %p691_p6 = scmp.lt.s32.totalorder %s46_s18, %s46_s18 }
  0x2c   :  { %p687_p5 = scmp.ne.s32.totalorder %s46_s18, %s686_s14  ;;  %p692_p7 = scmp.lt.s32.totalorder %s686_s14, %s686_s14 }
  0x2e   :  { %p693_p8 = por %p692_p7, %p691_p6 }
  0x30   :  { %p694_p9 = pnand %p693_p8, %p687_p5 }
  0x32   :  { %697 = shalt.err (!%p694_p9)
}
  0x33   :  { %51 = dma.hbm_to_vmem [thread:$0]  %s878_s3, 8192, %s46_s18, [#allocation6], %s751_s11, %s751_s11, %s752_s12  }
  0x34   :  { %s755_s16 = smov [#allocation8]   ;;  %s698_s21 = scalar_lea.hbm %s880_s5, 4096 }
  0x35   :  { %s59_s17 = sshll.u32 %s755_s16, 4  ;;  %p699_p10 = scmp.ne.s32.totalorder %s880_s5, %s698_s21  ;;  %s60_s17 = int_to_ptr.vmem [resolvable:$true] %s59_s17 }
  0x36   :  { %p702_p11 = scmp.lt.u32.totalorder %s698_s21, %s880_s5 }
  0x38   :  { %p704_p12 = pnand %p702_p11, %p699_p10 }
  0x3a   :  { %707 = shalt.err (!%p704_p12)
}
  0x3b   :  { %s708_s1 = scalar_lea.vmem %s60_s17, 4096  ;;  %p713_p0 = scmp.lt.s32.totalorder %s60_s17, %s60_s17 }
  0x3c   :  { %p709_p13 = scmp.ne.s32.totalorder %s60_s17, %s708_s1  ;;  %p714_p1 = scmp.lt.s32.totalorder %s708_s1, %s708_s1 }
  0x3e   :  { %p715_p2 = por %p714_p1, %p713_p0 }
  0x40   :  { %p716_p3 = pnand %p715_p2, %p709_p13 }
  0x42   :  { %719 = shalt.err (!%p716_p3)
}
  0x43   :  { %s756_s3 = smov 128   ;;  %s757_s11 = smov 8  }
  0x44   :  { %65 = dma.hbm_to_vmem [thread:$0]  %s880_s5, 4096, %s60_s17, [#allocation9], %s756_s3, %s756_s3, %s757_s11  }
  0x45   :  { %742 = dma.done.wait [#allocation3], 128  }
  0x46   :  { %743 = vsyncadd [#allocation3], 4294967168 }
  0x47   :  { %744 = dma.done.wait [#allocation6], 10240  }
  0x48   :  { %745 = vsyncadd [#allocation6], 4294957056 }
  0x49   :  { %746 = dma.done.wait [#allocation9], 4096  }
  0x4a   :  { %747 = vsyncadd [#allocation9], 4294963200  ;;  %v758_v0 = vmov 0.0   ;;  %v82_v1 = vld [vmem:[#allocation5 + $0x8] sm:$0xff]  ;;  %v84_v2 = vld [vmem:[#allocation5 + $0x18] sm:$0xff]  ;;  %vm109_vm0 = vcmask 523264  }
  0x4b   :  { %177 = vmatprep.mubr.f32.mxu0 %v758_v0  ;;  %v81_v3 = vld [vmem:[#allocation5] sm:$0xff]  ;;  %v506_v4 = vpack.c.bf16 %v84_v2, %v82_v1  ;;  %v83_v5 = vld [vmem:[#allocation5 + $0x10] sm:$0xff]  ;;  %v86_v6 = vld [vmem:[#allocation5 + $0x28] sm:$0xff] }
  0x4c   :  { %v88_v7 = vld [vmem:[#allocation5 + $0x38] sm:$0xff]  ;;  %v508_v8 = vpack.c.bf16 %v83_v5, %v81_v3  ;;  %v85_v10 = vld [vmem:[#allocation5 + $0x20] sm:$0xff]  ;;  %v87_v11 = vld [vmem:[#allocation5 + $0x30] sm:$0xff] }
  0x4d   :  { %v510_v9 = vpack.c.bf16 %v88_v7, %v86_v6  ;;  %v90_v12 = vld [vmem:[#allocation5 + $0x48] sm:$0xff]  ;;  %507 = vmatprep.subr.bf16.mxu0 %v506_v4  ;;  %v92_v13 = vld [vmem:[#allocation5 + $0x58] sm:$0xff]  ;;  %v512_v14 = vpack.c.bf16 %v87_v11, %v85_v10  ;;  %v89_v15 = vld [vmem:[#allocation5 + $0x40] sm:$0xff] }
  0x4e   :  { %509 = vmatpush1.bf16.msra.mxu0 %v508_v8  ;;  %v91_v16 = vld [vmem:[#allocation5 + $0x50] sm:$0xff]  ;;  %v514_v17 = vpack.c.bf16 %v92_v13, %v90_v12  ;;  %v94_v18 = vld [vmem:[#allocation5 + $0x68] sm:$0xff]  ;;  %v96_v19 = vld [vmem:[#allocation5 + $0x78] sm:$0xff] }
  0x4f   :  { %511 = vmatprep.subr.bf16.mxu0 %v510_v9  ;;  %v187_v20 = vld [vmem:[#allocation7 + $0x8] sm:$0xff]  ;;  %v189_v21 = vld [vmem:[#allocation7 + $0x18] sm:$0xff]  ;;  %v186_v22 = vld [vmem:[#allocation7] sm:$0xff]  ;;  %v516_v29 = vpack.c.bf16 %v91_v16, %v89_v15  ;;  %v518_v34 = vpack.c.bf16 %v96_v19, %v94_v18 }
  0x50   :  { %v188_v23 = vld [vmem:[#allocation7 + $0x10] sm:$0xff]  ;;  %v522_v24 = vpack.c.bf16 %v189_v21, %v187_v20  ;;  %v191_v26 = vld [vmem:[#allocation7 + $0x28] sm:$0xff]  ;;  %v193_v27 = vld [vmem:[#allocation7 + $0x38] sm:$0xff] }
  0x51   :  { %v524_v25 = vpack.c.bf16 %v188_v23, %v186_v22  ;;  %v190_v28 = vld [vmem:[#allocation7 + $0x20] sm:$0xff]  ;;  %v526_v30 = vpack.c.bf16 %v193_v27, %v191_v26  ;;  %v192_v31 = vld [vmem:[#allocation7 + $0x30] sm:$0xff]  ;;  %v195_v32 = vld [vmem:[#allocation7 + $0x48] sm:$0xff] }
  0x52   :  { %513 = vmatpush1.bf16.msra.mxu0 %v512_v14  ;;  %v197_v33 = vld [vmem:[#allocation7 + $0x58] sm:$0xff]  ;;  %v93_v35 = vld [vmem:[#allocation5 + $0x60] sm:$0xff]  ;;  %v95_v36 = vld [vmem:[#allocation5 + $0x70] sm:$0xff]  ;;  %523 = vmatprep.subr.bf16.mxu1 %v522_v24  ;;  %v528_v37 = vpack.c.bf16 %v192_v31, %v190_v28 }
  0x53   :  { %515 = vmatprep.subr.bf16.mxu0 %v514_v17  ;;  %525 = vmatpush1.bf16.msra.mxu1 %v524_v25  ;;  %v530_v38 = vpack.c.bf16 %v197_v33, %v195_v32  ;;  %v194_v39 = vld [vmem:[#allocation7 + $0x40] sm:$0xff]  ;;  %v196_v40 = vld [vmem:[#allocation7 + $0x50] sm:$0xff]  ;;  %v520_v41 = vpack.c.bf16 %v95_v36, %v93_v35  ;;  %v199_v42 = vld [vmem:[#allocation7 + $0x68] sm:$0xff] }
  0x54   :  { %527 = vmatprep.subr.bf16.mxu1 %v526_v30  ;;  %v201_v43 = vld [vmem:[#allocation7 + $0x78] sm:$0xff]  ;;  %v532_v44 = vpack.c.bf16 %v196_v40, %v194_v39  ;;  %v198_v46 = vld [vmem:[#allocation7 + $0x60] sm:$0xff]  ;;  %v200_v47 = vld [vmem:[#allocation7 + $0x70] sm:$0xff] }
  0x55   :  { %v534_v45 = vpack.c.bf16 %v201_v43, %v199_v42  ;;  %v80_v48 = vld [vmem:[#allocation2] sm:$0xff]  ;;  %v203_v49 = vld [vmem:[#allocation7 + $0x88] sm:$0xff]  ;;  %v536_v51 = vpack.c.bf16 %v200_v47, %v198_v46  ;;  %v202_v53 = vld [vmem:[#allocation7 + $0x80] sm:$0xff] }
  0x56   :  { %517 = vmatpush1.bf16.msra.mxu0 %v516_v29  ;;  %v205_v50 = vld [vmem:[#allocation7 + $0x98] sm:$0xff]  ;;  %v204_v54 = vld [vmem:[#allocation7 + $0x90] sm:$0xff]  ;;  %v207_v55 = vld [vmem:[#allocation7 + $0xa8] sm:$0xff] }
  0x57   :  { %519 = vmatprep.subr.bf16.mxu0 %v518_v34  ;;  %529 = vmatpush1.bf16.msra.mxu1 %v528_v37  ;;  %v538_v52 = vpack.c.bf16 %v205_v50, %v203_v49  ;;  %v209_v56 = vld [vmem:[#allocation7 + $0xb8] sm:$0xff]  ;;  %v540_v57 = vpack.c.bf16 %v204_v54, %v202_v53  ;;  %v206_v59 = vld [vmem:[#allocation7 + $0xa0] sm:$0xff]  ;;  %v208_v60 = vld [vmem:[#allocation7 + $0xb0] sm:$0xff] }
  0x58   :  { %531 = vmatprep.subr.bf16.mxu1 %v530_v38  ;;  %v542_v58 = vpack.c.bf16 %v209_v56, %v207_v55  ;;  %v211_v61 = vld [vmem:[#allocation7 + $0xc8] sm:$0xff]  ;;  %v213_v62 = vld [vmem:[#allocation7 + $0xd8] sm:$0xff]  ;;  %v544_v63 = vpack.c.bf16 %v208_v60, %v206_v59  ;;  %v210_v1 = vld [vmem:[#allocation7 + $0xc0] sm:$0xff] }
  0x59   :  { %v546_v0 = vpack.c.bf16 %v213_v62, %v211_v61  ;;  %v212_v2 = vld [vmem:[#allocation7 + $0xd0] sm:$0xff]  ;;  %v215_v3 = vld [vmem:[#allocation7 + $0xe8] sm:$0xff]  ;;  %v217_v4 = vld [vmem:[#allocation7 + $0xf8] sm:$0xff] }
  0x5a   :  { %521 = vmatpush1.bf16.msra.mxu0 %v520_v41  ;;  %v548_v5 = vpack.c.bf16 %v212_v2, %v210_v1  ;;  %v550_v6 = vpack.c.bf16 %v217_v4, %v215_v3  ;;  %v214_v7 = vld [vmem:[#allocation7 + $0xe0] sm:$0xff]  ;;  %v216_v8 = vld [vmem:[#allocation7 + $0xf0] sm:$0xff]  ;;  %v219_v9 = vld [vmem:[#allocation7 + $0x108] sm:$0xff] }
  0x5b   :  { %533 = vmatpush1.bf16.msra.mxu1 %v532_v44  ;;  %v221_v10 = vld [vmem:[#allocation7 + $0x118] sm:$0xff]  ;;  %v552_v11 = vpack.c.bf16 %v216_v8, %v214_v7  ;;  %v218_v13 = vld [vmem:[#allocation7 + $0x100] sm:$0xff]  ;;  %v220_v14 = vld [vmem:[#allocation7 + $0x110] sm:$0xff] }
  0x5c   :  { %535 = vmatprep.subr.bf16.mxu1 %v534_v45  ;;  %v554_v12 = vpack.c.bf16 %v221_v10, %v219_v9  ;;  %v223_v15 = vld [vmem:[#allocation7 + $0x128] sm:$0xff]  ;;  %v225_v16 = vld [vmem:[#allocation7 + $0x138] sm:$0xff]  ;;  %v556_v17 = vpack.c.bf16 %v220_v14, %v218_v13  ;;  %v222_v19 = vld [vmem:[#allocation7 + $0x120] sm:$0xff] }
  0x5d   :  { %469 = vmatmul.mubr.msk.f32.vlgmr.msra.gmra.mrb[0].mxu0 %vm109_vm0, %v80_v48  ;;  %v558_v18 = vpack.c.bf16 %v225_v16, %v223_v15  ;;  %v224_v20 = vld [vmem:[#allocation7 + $0x130] sm:$0xff]  ;;  %v227_v21 = vld [vmem:[#allocation7 + $0x148] sm:$0xff]  ;;  %v229_v22 = vld [vmem:[#allocation7 + $0x158] sm:$0xff] }
  0x5e   :  { %v560_v23 = vpack.c.bf16 %v224_v20, %v222_v19  ;;  %v562_v24 = vpack.c.bf16 %v229_v22, %v227_v21  ;;  %v226_v25 = vld [vmem:[#allocation7 + $0x140] sm:$0xff]  ;;  %v228_v26 = vld [vmem:[#allocation7 + $0x150] sm:$0xff]  ;;  %v231_v27 = vld [vmem:[#allocation7 + $0x168] sm:$0xff] }
  0x5f   :  { %537 = vmatpush1.bf16.msra.mxu1 %v536_v51  ;;  %v233_v28 = vld [vmem:[#allocation7 + $0x178] sm:$0xff]  ;;  %v564_v29 = vpack.c.bf16 %v228_v26, %v226_v25  ;;  %v230_v31 = vld [vmem:[#allocation7 + $0x160] sm:$0xff]  ;;  %v232_v32 = vld [vmem:[#allocation7 + $0x170] sm:$0xff] }
  0x60   :  { %539 = vmatprep.subr.bf16.mxu1 %v538_v52  ;;  %v566_v30 = vpack.c.bf16 %v233_v28, %v231_v27  ;;  %v235_v33 = vld [vmem:[#allocation7 + $0x188] sm:$0xff]  ;;  %v237_v34 = vld [vmem:[#allocation7 + $0x198] sm:$0xff]  ;;  %v568_v35 = vpack.c.bf16 %v232_v32, %v230_v31  ;;  %v234_v37 = vld [vmem:[#allocation7 + $0x180] sm:$0xff] }
  0x61   :  { %v570_v36 = vpack.c.bf16 %v237_v34, %v235_v33  ;;  %v236_v38 = vld [vmem:[#allocation7 + $0x190] sm:$0xff]  ;;  %v239_v39 = vld [vmem:[#allocation7 + $0x1a8] sm:$0xff]  ;;  %v241_v40 = vld [vmem:[#allocation7 + $0x1b8] sm:$0xff]  ;;  %v99_v33 = vlaneseq }
  0x62   :  { %v572_v41 = vpack.c.bf16 %v236_v38, %v234_v37  ;;  %v574_v42 = vpack.c.bf16 %v241_v40, %v239_v39  ;;  %v238_v43 = vld [vmem:[#allocation7 + $0x1a0] sm:$0xff]  ;;  %v240_v44 = vld [vmem:[#allocation7 + $0x1b0] sm:$0xff]  ;;  %v243_v45 = vld [vmem:[#allocation7 + $0x1c8] sm:$0xff] }
  0x63   :  { %541 = vmatpush1.bf16.msra.mxu1 %v540_v57  ;;  %v245_v46 = vld [vmem:[#allocation7 + $0x1d8] sm:$0xff]  ;;  %v576_v47 = vpack.c.bf16 %v240_v44, %v238_v43  ;;  %v242_v49 = vld [vmem:[#allocation7 + $0x1c0] sm:$0xff]  ;;  %v244_v50 = vld [vmem:[#allocation7 + $0x1d0] sm:$0xff]  ;;  %v100_v34 = vshrl.u32 %v99_v33, 7 }
  0x64   :  { %543 = vmatprep.subr.bf16.mxu1 %v542_v58  ;;  %v578_v48 = vpack.c.bf16 %v245_v46, %v243_v45  ;;  %v580_v51 = vpack.c.bf16 %v244_v50, %v242_v49  ;;  %v247_v52 = vld [vmem:[#allocation7 + $0x1e8] sm:$0xff]  ;;  %v249_v53 = vld [vmem:[#allocation7 + $0x1f8] sm:$0xff]  ;;  %v246_v55 = vld [vmem:[#allocation7 + $0x1e0] sm:$0xff] }
  0x65   :  { %v582_v54 = vpack.c.bf16 %v249_v53, %v247_v52  ;;  %v248_v56 = vld [vmem:[#allocation7 + $0x1f0] sm:$0xff]  ;;  %v351_v58 = vld [vmem:[#allocation8 + $0x80] sm:$0xff]  ;;  %v352_v59 = vld [vmem:[#allocation8 + $0x88] sm:$0xff]  ;;  %v105_v37 = vsub.s32 1, %v100_v34 }
  0x66   :  { %v584_v57 = vpack.c.bf16 %v248_v56, %v246_v55  ;;  %v335_v60 = vld [vmem:[#allocation8] sm:$0xff]  ;;  %v586_v61 = vpack.c.bf16 %v352_v59, %v351_v58  ;;  %v336_v62 = vld [vmem:[#allocation8 + $0x8] sm:$0xff]  ;;  %v337_v3 = vld [vmem:[#allocation8 + $0x10] sm:$0xff] }
  0x67   :  { %545 = vmatpush1.bf16.msra.mxu1 %v544_v63  ;;  %v353_v63 = vld [vmem:[#allocation8 + $0x90] sm:$0xff]  ;;  %v588_v1 = vpack.c.bf16 %v336_v62, %v335_v60  ;;  %v338_v4 = vld [vmem:[#allocation8 + $0x18] sm:$0xff]  ;;  %v339_v9 = vld [vmem:[#allocation8 + $0x20] sm:$0xff] }
  0x68   :  { %547 = vmatprep.subr.bf16.mxu1 %v546_v0  ;;  %v354_v0 = vld [vmem:[#allocation8 + $0x98] sm:$0xff]  ;;  %587 = vmatprep.subr.bf16.mxu0 %v586_v61  ;;  %v592_v7 = vpack.c.bf16 %v338_v4, %v337_v3  ;;  %v340_v10 = vld [vmem:[#allocation8 + $0x28] sm:$0xff]  ;;  %v341_v15 = vld [vmem:[#allocation8 + $0x30] sm:$0xff] }
  0x69   :  { %v590_v2 = vpack.c.bf16 %v354_v0, %v353_v63  ;;  %589 = vmatpush3.bf16.msra.mxu0 %v588_v1  ;;  %v596_v13 = vpack.c.bf16 %v340_v10, %v339_v9  ;;  %v342_v16 = vld [vmem:[#allocation8 + $0x38] sm:$0xff]  ;;  %v343_v21 = vld [vmem:[#allocation8 + $0x40] sm:$0xff]  ;;  %v344_v22 = vld [vmem:[#allocation8 + $0x48] sm:$0xff] }
  0x6a   :  { %v600_v19 = vpack.c.bf16 %v342_v16, %v341_v15  ;;  %v604_v25 = vpack.c.bf16 %v344_v22, %v343_v21  ;;  %v345_v27 = vld [vmem:[#allocation8 + $0x50] sm:$0xff]  ;;  %v346_v28 = vld [vmem:[#allocation8 + $0x58] sm:$0xff]  ;;  %v347_v46 = vld [vmem:[#allocation8 + $0x60] sm:$0xff] }
  0x6b   :  { %549 = vmatpush1.bf16.msra.mxu1 %v548_v5  ;;  %v355_v5 = vld [vmem:[#allocation8 + $0xa0] sm:$0xff]  ;;  %591 = vmatprep.subr.bf16.mxu0 %v590_v2  ;;  %v608_v31 = vpack.c.bf16 %v346_v28, %v345_v27  ;;  %v365_v49 = vld [vmem:[#allocation8 + $0xf0] sm:$0xff]  ;;  %v366_v50 = vld [vmem:[#allocation8 + $0xf8] sm:$0xff] }
  0x6c   :  { %551 = vmatprep.subr.bf16.mxu1 %v550_v6  ;;  %v356_v6 = vld [vmem:[#allocation8 + $0xa8] sm:$0xff]  ;;  %v349_v52 = vld [vmem:[#allocation8 + $0x70] sm:$0xff]  ;;  %v350_v53 = vld [vmem:[#allocation8 + $0x78] sm:$0xff] }
  0x6d   :  { %v594_v8 = vpack.c.bf16 %v356_v6, %v355_v5  ;;  %593 = vmatpush3.bf16.msra.mxu0 %v592_v7  ;;  %v250_v55 = vld [vmem:[%s879_s4] sm:$0x3]  ;;  %v445_v6 = vand.u32 127, %v99_v33  ;;  %s759_s4 = smov [#allocation10]  }
  0x6e   :  { %v470_v1 = vld [vmem:[%s881_s6] ss:$0 sm:$0xff]  ;;  %s458_s30 = sshll.u32 %s759_s4, 4  ;;  %s459_s30 = int_to_ptr.vmem [resolvable:$true] %s458_s30 }
  0x6f   :  { %553 = vmatpush1.bf16.msra.mxu1 %v552_v11  ;;  %v357_v11 = vld [vmem:[#allocation8 + $0xb0] sm:$0xff]  ;;  %595 = vmatprep.subr.bf16.mxu0 %v594_v8  ;;  %vm446_vm1 = vcmp.lt.s32.totalorder %v445_v6, 64  ;;  %s720_s8 = scalar_lea.vmem %s459_s30, 128  ;;  %p725_p5 = scmp.lt.s32.totalorder %s459_s30, %s459_s30 }
  0x70   :  { %555 = vmatprep.subr.bf16.mxu1 %v554_v12  ;;  %v358_v12 = vld [vmem:[#allocation8 + $0xb8] sm:$0xff]  ;;  %p721_p4 = scmp.ne.s32.totalorder %s459_s30, %s720_s8  ;;  %p726_p6 = scmp.lt.s32.totalorder %s720_s8, %s720_s8 }
  0x71   :  { %v598_v14 = vpack.c.bf16 %v358_v12, %v357_v11  ;;  %597 = vmatpush3.bf16.msra.mxu0 %v596_v13 }
  0x72   :  { %p727_p7 = por %p726_p6, %p725_p5 }
  0x73   :  { %557 = vmatpush1.bf16.msra.mxu1 %v556_v17  ;;  %v359_v17 = vld [vmem:[#allocation8 + $0xc0] sm:$0xff]  ;;  %599 = vmatprep.subr.bf16.mxu0 %v598_v14 }
  0x74   :  { %559 = vmatprep.subr.bf16.mxu1 %v558_v18  ;;  %v360_v18 = vld [vmem:[#allocation8 + $0xc8] sm:$0xff]  ;;  %p728_p8 = pnand %p727_p7, %p721_p4 }
  0x75   :  { %v602_v20 = vpack.c.bf16 %v360_v18, %v359_v17  ;;  %601 = vmatpush3.bf16.msra.mxu0 %v600_v19 }
  0x77   :  { %561 = vmatpush1.bf16.msra.mxu1 %v560_v23  ;;  %v361_v23 = vld [vmem:[#allocation8 + $0xd0] sm:$0xff]  ;;  %603 = vmatprep.subr.bf16.mxu0 %v602_v20 }
  0x78   :  { %563 = vmatprep.subr.bf16.mxu1 %v562_v24  ;;  %v362_v24 = vld [vmem:[#allocation8 + $0xd8] sm:$0xff] }
  0x79   :  { %v606_v26 = vpack.c.bf16 %v362_v24, %v361_v23  ;;  %605 = vmatpush3.bf16.msra.mxu0 %v604_v25 }
  0x7b   :  { %565 = vmatpush1.bf16.msra.mxu1 %v564_v29  ;;  %v363_v29 = vld [vmem:[#allocation8 + $0xe0] sm:$0xff]  ;;  %607 = vmatprep.subr.bf16.mxu0 %v606_v26 }
  0x7c   :  { %567 = vmatprep.subr.bf16.mxu1 %v566_v30  ;;  %v364_v30 = vld [vmem:[#allocation8 + $0xe8] sm:$0xff] }
  0x7d   :  { %v610_v32 = vpack.c.bf16 %v364_v30, %v363_v29  ;;  %609 = vmatpush3.bf16.msra.mxu0 %v608_v31 }
  0x7f   :  { %569 = vmatpush1.bf16.msra.mxu1 %v568_v35  ;;  %611 = vmatprep.subr.bf16.mxu0 %v610_v32  ;;  %v101_v35 = vsub.s32 0, %v100_v34 }
  0x80   :  { %571 = vmatprep.subr.bf16.mxu1 %v570_v36  ;;  %v97_v36 = vld [vmem:[%s877_s2] sm:$0x3] }
  0x81   :  { %v102_v38 = vrot.slane %v97_v36, %v101_v35  ;;  %v106_v39 = vrot.slane %v97_v36, %v105_v37  ;;  %v255_v56 = vrot.slane %v250_v55, %v101_v35 }
  0x83   :  { %573 = vmatpush1.bf16.msra.mxu1 %v572_v41 }
  0x84   :  { %575 = vmatprep.subr.bf16.mxu1 %v574_v42 }
  0x87   :  { %577 = vmatpush1.bf16.msra.mxu1 %v576_v47  ;;  %v348_v47 = vld [vmem:[#allocation8 + $0x68] sm:$0xff] }
  0x88   :  { %579 = vmatprep.subr.bf16.mxu1 %v578_v48  ;;  %v612_v48 = vpack.c.bf16 %v348_v47, %v347_v46 }
  0x8a   :  { %613 = vmatpush3.bf16.msra.mxu0 %v612_v48 }
  0x8b   :  { %581 = vmatpush1.bf16.msra.mxu1 %v580_v51  ;;  %v614_v51 = vpack.c.bf16 %v366_v50, %v365_v49 }
  0x8c   :  { %583 = vmatprep.subr.bf16.mxu1 %v582_v54  ;;  %v616_v54 = vpack.c.bf16 %v350_v53, %v349_v52 }
  0x8d   :  { %615 = vmatprep.subr.bf16.mxu0 %v614_v51 }
  0x8e   :  { %617 = vmatpush3.bf16.msra.mxu0 %v616_v54 }
  0x8f   :  { %585 = vmatpush1.bf16.msra.mxu1 %v584_v57  ;;  %v259_v57 = vrot.slane %v250_v55, %v105_v37 }
 0x130   :  { %v179_v40 = vpop.f32.mrb[0].mxu0 }
 0x131   :  { %v180_v41 = vadd.f32 %v179_v40, %v102_v38  ;;  %v181_v42 = vpop.f32.mrb[1].mxu0 }
 0x132   :  { %v182_v43 = vadd.f32 %v181_v42, %v106_v39 }
 0x133   :  { %v184_v45 = vmax.f32 %v180_v41, 0.0 }
 0x134   :  { %v185_v44 = vmax.f32 %v182_v43, 0.0 }
 0x136   :  { %326 = vmatprep.mubr.f32.mxu1 %v185_v44 }
 0x137   :  { %327 = vmatmul.mubr.f32.vlgmr.msra.gmra.mrb[0].mxu1 %v184_v45 }
 0x20a   :  { %v328_v58 = vpop.f32.mrb[0].mxu1 }
 0x20b   :  { %v329_v59 = vadd.f32 %v328_v58, %v255_v56  ;;  %v330_v60 = vpop.f32.mrb[1].mxu1 }
 0x20c   :  { %v331_v61 = vadd.f32 %v330_v60, %v259_v57 }
 0x20d   :  { %v333_v63 = vmax.f32 %v329_v59, 0.0 }
 0x20e   :  { %v334_v62 = vmax.f32 %v331_v61, 0.0 }
 0x210   :  { %438 = vmatprep.mubr.f32.mxu0 %v334_v62 }
 0x211   :  { %439 = vmatmul.mubr.f32.vlgmr.msra.gmra.mrb[2].mxu0 %v333_v63 }
 0x2e4   :  { %v503_v0 = vpop.f32.mrb[2].mxu0 }
 0x2e5   :  { %v504_v2 = vpop.f32.mrb[3].mxu0 }
 0x2e6   :  { %v505_v3 = vadd.f32 %v504_v2, %v503_v0 }
 0x2e8   :  { %v441_v4 = vadd.f32 %v505_v3, %v470_v1 }
 0x2ea   :  { %v448_v5 = vmul.f32 1.442695, %v441_v4  ;;  %628 = vtanh.f32 %v441_v4 }
 0x2ec   :  { %630 = vpow2.f32 %v448_v5 }
 0x2f4   :  { %v629_v7 = vpop.eup %628 }
 0x2f6   :  { %v631_v8 = vpop.eup %630 }
 0x2f7   :  { %v450_v9 = vsel %vm446_vm1, %v629_v7, %v631_v8 }
 0x2f8   :  { %451 = vst [vmem:[#allocation10] sm:$0xff] %v450_v9 }
 0x2f9   :  { %731 = shalt.err (!%p728_p8)
}
 0x2fa   :  { %s732_s10 = scalar_lea.hbm %s882_s7, 128 }
 0x2fb   :  { %p733_p9 = scmp.ne.s32.totalorder %s882_s7, %s732_s10  ;;  %p736_p10 = scmp.lt.u32.totalorder %s732_s10, %s882_s7 }
 0x2fd   :  { %p738_p11 = pnand %p736_p10, %p733_p9 }
 0x2ff   :  { %741 = shalt.err (!%p738_p11)
}
 0x300   :  { %461 = dma.vmem_to_hbm [thread:$0]  %s459_s30, 128, %s882_s7, [#allocation4]  }
 0x301   :  { %748 = dma.done.wait [#allocation4], 128  }
 0x302   :  { %749 = vsyncadd [#allocation4], 4294967168 }
 0x303   :  { %465 = vsyncpa [#allocation3], 1 }
 0x304   :  { %466 = vsyncpa [#allocation6], 1 }
 0x305   :  { %467 = vsyncpa [#allocation9], 1 }
 0x306   :  { %468 = vsyncpa [#allocation4], 1 }

</bundles_post_ra>
